<compile_context>
chip_gen: v6e
topology: v6e:2x2x1
jax: 0.10.0
libtpu: 0.0.40
codegen_flags: <defaults>
</compile_context>

<pallas_src>
import functools

import jax
import jax.numpy as jnp
from jax.experimental import pallas as pl
from jax.experimental.pallas import tpu as pltpu

TILE_Q = 128        # destination-node row tile
TILE_K = 256        # source-node row tile (fills the 256-wide MXU on v6e/v7x)
LANE = 128          # feature-lane padding quantum
NEG_INF = -1e30     # finite "minus infinity" so exp() never sees inf - inf
LEAKY_SLOPE = 0.2   # PyG GATConv default negative_slope


def _round_up(x, m):
    return (x + m - 1) // m * m


def _pad2(a, rows, cols):
    r, c = a.shape
    return jnp.pad(a, ((0, rows - r), (0, cols - c)))


# --------------------------- kernel 1: node transform + scores ---------------------------

def gat_transform_kernel(x_ref, w_ref, a_ref, h_ref, s_ref):
    """H = X @ W (f32 acc), S = H @ [a_dst | a_src]; H stored as bf16 for the attention sweep.

    x_ref : [TQ, C_in]       bf16
    w_ref : [C_in, C_out]    bf16 (per-head weight slabs, 128-lane aligned)
    a_ref : [C_out, 2*heads] f32  (col h = a_dst of head h, col heads+h = a_src of head h)
    h_ref : [TQ, C_out]      bf16 out
    s_ref : [TQ, 2*heads]    f32  out
    """
    hq = jnp.dot(x_ref[...], w_ref[...], preferred_element_type=jnp.float32)
    s_ref[...] = jnp.dot(hq, a_ref[...], preferred_element_type=jnp.float32)
    h_ref[...] = hq.astype(h_ref.dtype)


def gat_transform_pallas(x_bf, w_bf, a_f32):
    n_pad, c_in = x_bf.shape
    c_out = w_bf.shape[1]
    n_s = a_f32.shape[1]
    return pl.pallas_call(
        gat_transform_kernel,
        out_shape=(jax.ShapeDtypeStruct((n_pad, c_out), jnp.bfloat16),
                   jax.ShapeDtypeStruct((n_pad, n_s), jnp.float32)),
        grid_spec=pltpu.PrefetchScalarGridSpec(
            num_scalar_prefetch=0,
            grid=(n_pad // TILE_Q,),
            in_specs=[
                pl.BlockSpec((TILE_Q, c_in), lambda i: (i, 0)),
                pl.BlockSpec((c_in, c_out), lambda i: (0, 0)),
                pl.BlockSpec((c_out, n_s), lambda i: (0, 0)),
            ],
            out_specs=(pl.BlockSpec((TILE_Q, c_out), lambda i: (i, 0)),
                       pl.BlockSpec((TILE_Q, n_s), lambda i: (i, 0))),
        ),
        compiler_params=pltpu.CompilerParams(dimension_semantics=("parallel",)),
    )(x_bf, w_bf, a_f32)


# ----------------------- kernel 2: attention aggregation (all heads) ----------------------

def gat_attn_kernel(sdst_ref, ssrc_ref, h_ref, b_ref, adj_ref, out_ref,
                    m_sc, l_sc, acc_sc, *, heads, h_pad, apply_elu):
    """Flash-style GAT aggregation over source-node tiles, all heads fused.

    sdst_ref : [TQ, heads]        f32  per-destination scores (fixed across ki)
    ssrc_ref : [heads, TK]        f32  per-source scores (streamed over ki)
    h_ref    : [TK, heads*h_pad]  bf16 transformed source features
    b_ref    : [1, heads*h_pad]   f32  bias (head slabs)
    adj_ref  : [TQ, TK]           int8 edge multiplicity (self-loops added), 0 = no edge
    out_ref  : [TQ, heads*h_pad]  bf16/f32
    """
    ki = pl.program_id(1)

    @pl.when(ki == 0)
    def _init():
        m_sc[...] = jnp.full(m_sc.shape, NEG_INF, jnp.float32)
        l_sc[...] = jnp.zeros(l_sc.shape, jnp.float32)
        acc_sc[...] = jnp.zeros(acc_sc.shape, jnp.float32)

    adj = adj_ref[...].astype(jnp.float32)                 # [TQ, TK]
    has_edge = adj > 0.0

    for h in range(heads):                                 # static unroll over heads
        sl = slice(h * h_pad, (h + 1) * h_pad)

        e = sdst_ref[:, h:h + 1] + ssrc_ref[h:h + 1, :]    # [TQ, TK]
        e = jnp.where(e > 0.0, e, LEAKY_SLOPE * e)         # LeakyReLU(0.2)
        e = jnp.where(has_edge, e, NEG_INF)

        m_prev = m_sc[h]                                   # [TQ, 1]
        m_new = jnp.maximum(m_prev, jnp.max(e, axis=-1, keepdims=True))
        corr = jnp.exp(m_prev - m_new)
        # adj == 0 already zeroes masked lanes (exp underflows for finite m_new); no select.
        p = adj * jnp.exp(e - m_new)                       # [TQ, TK]

        l_sc[h] = corr * l_sc[h] + jnp.sum(p, axis=-1, keepdims=True)
        acc_sc[:, sl] = corr * acc_sc[:, sl] + jnp.dot(
            p.astype(jnp.bfloat16), h_ref[:, sl], preferred_element_type=jnp.float32)
        m_sc[h] = m_new

    @pl.when(ki == pl.num_programs(1) - 1)
    def _finalize():
        for h in range(heads):
            sl = slice(h * h_pad, (h + 1) * h_pad)
            l = l_sc[h]
            denom = jnp.where(l > 0.0, l, 1.0)             # padded rows have no edges
            out = acc_sc[:, sl] / denom + b_ref[:, sl]     # exact division (once per q-tile)
            if apply_elu:
                out = jnp.where(out > 0.0, out, jnp.exp(out) - 1.0)
            out_ref[:, sl] = out.astype(out_ref.dtype)


def gat_attention_pallas(s_dst, s_src, h_bf, bias, adj_i8, *,
                         heads, h_pad, apply_elu, out_dtype):
    n_pad, c_out = h_bf.shape
    nq = n_pad // TILE_Q
    nk = n_pad // TILE_K

    kernel = functools.partial(gat_attn_kernel, heads=heads, h_pad=h_pad,
                               apply_elu=apply_elu)
    return pl.pallas_call(
        kernel,
        out_shape=jax.ShapeDtypeStruct((n_pad, c_out), out_dtype),
        grid_spec=pltpu.PrefetchScalarGridSpec(
            num_scalar_prefetch=0,
            grid=(nq, nk),
            in_specs=[
                pl.BlockSpec((TILE_Q, heads), lambda qi, ki: (qi, 0)),   # s_dst
                pl.BlockSpec((heads, TILE_K), lambda qi, ki: (0, ki)),   # s_src
                pl.BlockSpec((TILE_K, c_out), lambda qi, ki: (ki, 0)),   # H (bf16)
                pl.BlockSpec((1, c_out), lambda qi, ki: (0, 0)),         # bias
                pl.BlockSpec((TILE_Q, TILE_K), lambda qi, ki: (qi, ki)), # adjacency (int8)
            ],
            out_specs=pl.BlockSpec((TILE_Q, c_out), lambda qi, ki: (qi, 0)),
            scratch_shapes=[
                pltpu.VMEM((heads, TILE_Q, 1), jnp.float32),   # running max m
                pltpu.VMEM((heads, TILE_Q, 1), jnp.float32),   # running sum l
                pltpu.VMEM((TILE_Q, c_out), jnp.float32),      # output accumulator
            ],
        ),
        compiler_params=pltpu.CompilerParams(
            dimension_semantics=("parallel", "arbitrary"),
        ),
    )(s_dst, s_src, h_bf, bias, adj_i8)


# --------------------------------------- wrapper ------------------------------------------

def dense_gat_adjacency(edge_index, num_nodes):
    """A[i, j] = multiplicity of edge j -> i; existing self-loops removed, then one self-loop
    per node added (PyG GATConv add_self_loops convention).  Stored as int8 (multiplicities
    are assumed < 128; use bf16 instead for graphs with heavier edge duplication)."""
    src, dst = edge_index[0], edge_index[1]
    w = (src != dst).astype(jnp.int32)
    adj = jnp.zeros((num_nodes, num_nodes), jnp.int32).at[dst, src].add(w)
    adj = adj + jnp.eye(num_nodes, dtype=jnp.int32)
    return adj.astype(jnp.int8)


def gat_forward(x, edge_index, params, *, heads=1):
    """GAT.forward: h = elu(conv1(x, ei)); return conv2(h, ei)."""
    n, c_in = x.shape
    h_feats = params["w2"].shape[1]
    h_pad = _round_up(h_feats, LANE)

    n_pad = _round_up(n, max(TILE_Q, TILE_K))
    adj_pad = _pad2(dense_gat_adjacency(edge_index, n), n_pad, n_pad)

    # ---- layer 1: GATConv(in_feats, h_feats, heads, concat=True) + fused ELU ----
    c_in_pad = _round_up(c_in, LANE)
    x_pad = _pad2(x, n_pad, c_in_pad).astype(jnp.bfloat16)

    c1_out = heads * h_pad
    w1_slab = jnp.zeros((c_in_pad, c1_out), jnp.float32)
    a1 = jnp.zeros((c1_out, 2 * heads), jnp.float32)
    b1_slab = jnp.zeros((1, c1_out), jnp.float32)
    for hd in range(heads):
        r = slice(hd * h_pad, hd * h_pad + h_feats)
        w1_slab = w1_slab.at[:c_in, r].set(params["w1"][:, hd * h_feats:(hd + 1) * h_feats])
        a1 = a1.at[r, hd].set(params["a_dst1"][hd])
        a1 = a1.at[r, heads + hd].set(params["a_src1"][hd])
        b1_slab = b1_slab.at[0, r].set(params["b1"][0, hd * h_feats:(hd + 1) * h_feats])

    h1, s1 = gat_transform_pallas(x_pad, w1_slab.astype(jnp.bfloat16), a1)
    h1_out = gat_attention_pallas(
        s1[:, :heads],                 # s_dst  [n_pad, heads]
        s1[:, heads:].T,               # s_src  [heads, n_pad]
        h1, b1_slab, adj_pad,
        heads=heads, h_pad=h_pad, apply_elu=True,   # ELU commutes with concat -> fuse per head
        out_dtype=jnp.bfloat16)        # padded head-slab columns are exactly zero

    # ---- layer 2: GATConv(heads*h_feats, h_feats, heads=1, concat=False) ----
    # Feed the padded bf16 layer-1 output directly; scatter W2 rows into head slabs.
    w2_slab = jnp.zeros((c1_out, h_pad), jnp.float32)
    for hd in range(heads):
        w2_slab = w2_slab.at[hd * h_pad:hd * h_pad + h_feats, :h_feats].set(
            params["w2"][hd * h_feats:(hd + 1) * h_feats, :])
    a2 = jnp.zeros((h_pad, 2), jnp.float32)
    a2 = a2.at[:h_feats, 0].set(params["a_dst2"][0])
    a2 = a2.at[:h_feats, 1].set(params["a_src2"][0])
    b2_slab = jnp.zeros((1, h_pad), jnp.float32).at[0, :h_feats].set(params["b2"][0])

    h2, s2 = gat_transform_pallas(h1_out, w2_slab.astype(jnp.bfloat16), a2)
    out = gat_attention_pallas(
        s2[:, :1], s2[:, 1:].T, h2, b2_slab, adj_pad,
        heads=1, h_pad=h_pad, apply_elu=False, out_dtype=jnp.float32)
    return out[:n, :h_feats]


# ------------------------- pure-JAX reference (no Pallas) -------------------------

def _gat_conv_ref(x, w, a_src, a_dst, b, adj, apply_elu):
    h = jnp.dot(x.astype(jnp.bfloat16), w.astype(jnp.bfloat16),
                preferred_element_type=jnp.float32)
    s_src = jnp.sum(h * a_src, axis=-1)
    s_dst = jnp.sum(h * a_dst, axis=-1)
    e = s_dst[:, None] + s_src[None, :]
    e = jnp.where(e > 0.0, e, LEAKY_SLOPE * e)
    e = jnp.where(adj > 0.0, e, NEG_INF)
    m = jnp.max(e, axis=-1, keepdims=True)
    p = jnp.where(adj > 0.0, adj * jnp.exp(e - m), 0.0)
    l = jnp.sum(p, axis=-1, keepdims=True)
    out = jnp.dot(p.astype(jnp.bfloat16), h.astype(jnp.bfloat16),
                  preferred_element_type=jnp.float32) / l + b
    if apply_elu:
        out = jnp.where(out > 0.0, out, jnp.exp(out) - 1.0)
    return out


def gat_ref(x, edge_index, params, *, heads=1):
    n = x.shape[0]
    h_feats = params["w2"].shape[1]
    adj = dense_gat_adjacency(edge_index, n).astype(jnp.float32)
    outs = []
    for hd in range(heads):
        w = params["w1"][:, hd * h_feats:(hd + 1) * h_feats]
        outs.append(_gat_conv_ref(x, w, params["a_src1"][hd:hd + 1],
                                  params["a_dst1"][hd:hd + 1],
                                  params["b1"][:, hd * h_feats:(hd + 1) * h_feats],
                                  adj, True))
    h1 = jnp.concatenate(outs, axis=1)
    return _gat_conv_ref(h1, params["w2"], params["a_src2"], params["a_dst2"],
                         params["b2"], adj, False)


if __name__ == "__main__":
    key = jax.random.PRNGKey(0)
    kx, ke, k1, k2, k3, k4, k5, k6, k7, k8 = jax.random.split(key, 10)

    N, IN_FEATS, H_FEATS, HEADS, E = 256, 48, 32, 2, 1024

    x = jax.random.normal(kx, (N, IN_FEATS), dtype=jnp.float32)
    edge_index = jax.random.randint(ke, (2, E), 0, N, dtype=jnp.int32)

    def glorot(k, shape):
        fan_in, fan_out = shape[-2], shape[-1]
        lim = jnp.sqrt(6.0 / (fan_in + fan_out))
        return jax.random.uniform(k, shape, jnp.float32, -lim, lim)

    params = {
        "w1": glorot(k1, (IN_FEATS, HEADS * H_FEATS)),
        "a_src1": glorot(k2, (HEADS, H_FEATS)),
        "a_dst1": glorot(k3, (HEADS, H_FEATS)),
        "b1": 0.1 * jax.random.normal(k4, (1, HEADS * H_FEATS), jnp.float32),
        "w2": glorot(k5, (HEADS * H_FEATS, H_FEATS)),
        "a_src2": glorot(k6, (1, H_FEATS)),
        "a_dst2": glorot(k7, (1, H_FEATS)),
        "b2": 0.1 * jax.random.normal(k8, (1, H_FEATS), jnp.float32),
    }

    out = jax.block_until_ready(gat_forward(x, edge_index, params, heads=HEADS))
    assert out.shape == (N, H_FEATS)

    ref = jax.block_until_ready(gat_ref(x, edge_index, params, heads=HEADS))
    max_err = float(jnp.max(jnp.abs(out - ref)))
    # Tolerance covers bf16 MXU rounding decorrelation between online (tiled) softmax and the
    # direct reference softmax; gross semantic errors would be O(1).
    assert jnp.allclose(out, ref, atol=5e-2, rtol=5e-2), f"mismatch: max abs err {max_err}"

    print("KERNEL_OK")
</pallas_src>

<mosaic_0001>
module attributes {stable_mosaic.version = 11 : i64} {
  func.func @gat_transform_kernel(%arg0: i32, %arg1: memref<128x128xbf16, #tpu.memory_space<vmem>>, %arg2: memref<128x256xbf16, #tpu.memory_space<vmem>>, %arg3: memref<256x4xf32, #tpu.memory_space<vmem>>, %arg4: memref<128x256xbf16, #tpu.memory_space<vmem>>, %arg5: memref<128x4xf32, #tpu.memory_space<vmem>>) attributes {dimension_semantics = [#tpu.dimension_semantics<parallel>], iteration_bounds = array<i64: 2>, scalar_prefetch = 0 : i64, scratch_operands = 0 : i64, tpu.core_type = #tpu.core_type<tc>, window_params = [{transform_indices = @transform_0, window_bounds = array<i64: 128, 128>}, {pipeline_mode = #tpu.pipeline_mode<synchronous>, transform_indices = @transform_1, window_bounds = array<i64: 128, 256>}, {pipeline_mode = #tpu.pipeline_mode<synchronous>, transform_indices = @transform_2, window_bounds = array<i64: 256, 4>}, {transform_indices = @transform_3, window_bounds = array<i64: 128, 256>}, {transform_indices = @transform_4, window_bounds = array<i64: 128, 4>}]} {
    %c0 = arith.constant 0 : index
    %c0_0 = arith.constant 0 : index
    %0 = vector.load %arg1[%c0, %c0_0] : memref<128x128xbf16, #tpu.memory_space<vmem>>, vector<128x128xbf16>
    %c0_1 = arith.constant 0 : index
    %c0_2 = arith.constant 0 : index
    %1 = vector.load %arg2[%c0_1, %c0_2] : memref<128x256xbf16, #tpu.memory_space<vmem>>, vector<128x256xbf16>
    %cst = arith.constant dense<0.000000e+00> : vector<128x256xf32>
    %2 = tpu.matmul %0, %1, %cst {dimension_numbers = #tpu.dot_dimension_numbers<[1], [0], [0], [1], [0, 0, 1, 1], [], []>} : vector<128x128xbf16>, vector<128x256xbf16>, vector<128x256xf32> -> vector<128x256xf32>
    %c0_3 = arith.constant 0 : index
    %c0_4 = arith.constant 0 : index
    %3 = vector.load %arg3[%c0_3, %c0_4] : memref<256x4xf32, #tpu.memory_space<vmem>>, vector<256x4xf32>
    %cst_5 = arith.constant dense<0.000000e+00> : vector<128x4xf32>
    %4 = tpu.matmul %2, %3, %cst_5 {dimension_numbers = #tpu.dot_dimension_numbers<[1], [0], [0], [1], [0, 0, 1, 1], [], []>} : vector<128x256xf32>, vector<256x4xf32>, vector<128x4xf32> -> vector<128x4xf32>
    %c0_6 = arith.constant 0 : index
    %c0_7 = arith.constant 0 : index
    %5 = vector.load %arg5[%c0_6, %c0_7] : memref<128x4xf32, #tpu.memory_space<vmem>>, vector<128x4xf32>
    tpu.vector_store %arg5[%c0_6, %c0_7], %4 {strides = array<i32>} : memref<128x4xf32, #tpu.memory_space<vmem>>, vector<128x4xf32>,
    %6 = arith.truncf %2 : vector<128x256xf32> to vector<128x256xbf16>
    %c0_8 = arith.constant 0 : index
    %c0_9 = arith.constant 0 : index
    %7 = vector.load %arg4[%c0_8, %c0_9] : memref<128x256xbf16, #tpu.memory_space<vmem>>, vector<128x256xbf16>
    tpu.vector_store %arg4[%c0_8, %c0_9], %6 {strides = array<i32>} : memref<128x256xbf16, #tpu.memory_space<vmem>>, vector<128x256xbf16>,
    return
  }
  func.func @transform_0(%arg0: i32) -> (i32, i32) {
    %c0_i32 = arith.constant 0 : i32
    %c0_i32_0 = arith.constant 0 : i32
    return %arg0, %c0_i32 : i32, i32
  }
  func.func @transform_1(%arg0: i32) -> (i32, i32) {
    %c0_i32 = arith.constant 0 : i32
    %c0_i32_0 = arith.constant 0 : i32
    %c0_i32_1 = arith.constant 0 : i32
    return %c0_i32, %c0_i32_0 : i32, i32
  }
  func.func @transform_2(%arg0: i32) -> (i32, i32) {
    %c0_i32 = arith.constant 0 : i32
    %c0_i32_0 = arith.constant 0 : i32
    %c0_i32_1 = arith.constant 0 : i32
    return %c0_i32, %c0_i32_0 : i32, i32
  }
  func.func @transform_3(%arg0: i32) -> (i32, i32) {
    %c0_i32 = arith.constant 0 : i32
    %c0_i32_0 = arith.constant 0 : i32
    return %arg0, %c0_i32 : i32, i32
  }
  func.func @transform_4(%arg0: i32) -> (i32, i32) {
    %c0_i32 = arith.constant 0 : i32
    %c0_i32_0 = arith.constant 0 : i32
    return %arg0, %c0_i32 : i32, i32
  }
}

</mosaic_0001>

<bundles_post_ra>
// kernel: tpu_custom_call.1
= control target key start
LH: loop header
LB: loop body
LE: loop exit
PB: predicated region body
PF: predicated region fallthrough
CT: control target
= control target key end

     0   :  { %10 = vsyncpa [#allocation3], 0  ;;  %s1549_s0 = inlined_call_operand.vmem [shape: bf16[256,128], index: 0, kind: input, shape index: {}]   ;;  %s1550_s1 = inlined_call_operand.vmem [shape: bf16[128,256], index: 1, kind: input, shape index: {}]   ;;  %s1551_s2 = inlined_call_operand.vmem [shape: f32[256,4], index: 2, kind: input, shape index: {}]   ;;  %s1552_s3 = inlined_call_operand.hbm [shape: bf16[256,256], index: 3, kind: output, shape index: {0}]   ;;  %s1553_s4 = inlined_call_operand.vmem [shape: f32[256,4], index: 4, kind: output, shape index: {1}]  }
   0x1   :  { %12 = vsyncpa [#allocation3 + $0x1], 0  ;;  %s1222_s15 = smov 0   ;;  %s1224_s16 = smov 0  }
   0x2   :  { %s1226_s17 = smov 0   ;;  %s1228_s18 = smov 0  }
   0x3 LB: > { %s1243_s19 = sadd.s32 4294967295, %s1191_s18   ;;  %s904_s20 = sadd.s32 4294967294, %s1191_s18   ;;  %s1191_s18 = sphi %s1228_s18, %s1559_s18   ;;  %s1187_s17 = sphi %s1226_s17, %s1558_s17   ;;  %s1183_s16 = sphi %s1224_s16, %s1557_s16   ;;  %s1179_s15 = sphi %s1222_s15, %s1556_s15  }
   0x4   : > { %s1247_s21 = sadd.s32 1, %s1191_s18   ;;  %s93_s22 = sadd.s32 1, %s1187_s17 }
   0x5   : > { %s90_s23 = ssub.s32 %s1191_s18, %s1247_s21  ;;  %p103_p0 = scmp.ne.s32.totalorder %s1187_s17, %s1183_s16 }
   0x6   : > { %p91_p1 = scmp.eq.s32.totalorder %s90_s23, 0  ;;  %p104_p2 = scmp.eq.s32.totalorder %s1243_s19, 1 }
   0x7   : > { %p109_p3 = scmp.ne.s32.totalorder %s1183_s16, %s1179_s15  ;;  %p110_p4 = scmp.eq.s32.totalorder %s904_s20, 1 }
   0x8   : > { %s1258_s24 = scalar_select %p91_p1, %s1187_s17, %s93_s22  }
   0x9   : > { %p1260_p5 = por %p104_p2, %p103_p0  ;;  %p1264_p6 = por %p110_p4, %p109_p3 }
   0xa   : > { %p907_p7 = scmp.ge.s32.totalorder %s1191_s18, 1  ;;  %p169_p8 = scmp.lt.s32.totalorder %s1191_s18, 3 }
   0xc   : > { %p170_p9 = pnand %p907_p7, %p169_p8 }
   0xd   : > { %s909_s29 = sshll.u32 (!%p170_p9), %s1243_s19, 4  ;;  %s976_s13 = sshll.u32 (!%p170_p9), %s1243_s19, 11 }
   0xe   : > { %173 = sbr.rel (%p170_p9) target bundleno = 506 (0x1fa), region = 32  ;;  %p201_p10 = scmp.lt.s32.totalorder (!%p170_p9), %s909_s29, 31 }
   0xf   : > { %s1465_s23 = scalar_lea.hbm (!%p170_p9), %s1552_s3, %s976_s13  ;;  %s1194_s19 = smov (!%p170_p9), [#allocation2]  }
  0x10   : > { %s1135_s5 = sshll.u32 (!%p170_p9), %s1194_s19, 4  ;;  %s1136_s5 = int_to_ptr.vmem [resolvable:$false] %s1135_s5 }
  0x11   : > { %s1137_s6 = scalar_lea.vmem (!%p170_p9), %s1136_s5, 4096 }
  0x13   : > { %v1099_v0 = vld [vmem:[%s1550_s1 + $0x74] ss:$8 sps:$4 sm:$0xff]   ;;  %v1101_v1 = vld [vmem:[%s1550_s1 + $0x70] ss:$8 sps:$4 sm:$0xff]   ;;  %v1193_v2 = vmov 0   ;;  %s1561_s29 = smov (!%p201_p10, %s909_s29), 31 }
  0x14   : > { %406 = vmatprep.mubr.bf16.mxu0 %v1193_v2  ;;  %374 = vmatprep.subr.bf16.mxu0 %v1099_v0  ;;  %v1102_v3 = vld [vmem:[%s1550_s1 + $0x64] ss:$8 sps:$4 sm:$0xff]   ;;  %v1104_v4 = vld [vmem:[%s1550_s1 + $0x60] ss:$8 sps:$4 sm:$0xff]   ;;  %v1105_v5 = vld [vmem:[%s1550_s1 + $0x54] ss:$8 sps:$4 sm:$0xff]  }
  0x15   : > { %375 = vmatpush1.bf16.msra.mxu0 %v1101_v1  ;;  %s910_s12 = sshll.u32 %s1561_s29, 2  ;;  %v1107_v6 = vld [vmem:[%s1550_s1 + $0x50] ss:$8 sps:$4 sm:$0xff]   ;;  %v1108_v7 = vld [vmem:[%s1550_s1 + $0x44] ss:$8 sps:$4 sm:$0xff]  }
  0x16   : > { %376 = vmatprep.subr.bf16.mxu0 %v1102_v3  ;;  %s1299_s28 = scalar_lea.vmem %s1549_s0, %s910_s12  ;;  %v1110_v8 = vld [vmem:[%s1550_s1 + $0x40] ss:$8 sps:$4 sm:$0xff]   ;;  %v1111_v9 = vld [vmem:[%s1550_s1 + $0x34] ss:$8 sps:$4 sm:$0xff]   ;;  %v1113_v10 = vld [vmem:[%s1550_s1 + $0x30] ss:$8 sps:$4 sm:$0xff]  }
  0x17   : > { %v1114_v11 = vld [vmem:[%s1550_s1 + $0x24] ss:$8 sps:$4 sm:$0xff]   ;;  %v1116_v12 = vld [vmem:[%s1550_s1 + $0x20] ss:$8 sps:$4 sm:$0xff]   ;;  %v518_v13 = vld [vmem:[%s1551_s2 + $0xf8] sm:$0xff] }
  0x18   : > { %977 = vmatprep.subr.mxu1 %v518_v13  ;;  %v502_v14 = vld [vmem:[%s1551_s2 + $0x78] sm:$0xff]  ;;  %v517_v15 = vld [vmem:[%s1551_s2 + $0xf0] sm:$0xff]  ;;  %v516_v18 = vld [vmem:[%s1551_s2 + $0xe8] sm:$0xff] }
  0x19   : > { %377 = vmatpush1.bf16.msra.mxu0 %v1104_v4  ;;  %v501_v16 = vld [vmem:[%s1551_s2 + $0x70] sm:$0xff]  ;;  %978 = vmatpush3.msra.mxu1 %v502_v14  ;;  %v500_v19 = vld [vmem:[%s1551_s2 + $0x68] sm:$0xff]  ;;  %v515_v20 = vld [vmem:[%s1551_s2 + $0xe0] sm:$0xff] }
  0x1a   : > { %378 = vmatprep.subr.bf16.mxu0 %v1105_v5  ;;  %v1117_v17 = vld [vmem:[%s1550_s1 + $0x14] ss:$8 sps:$4 sm:$0xff]   ;;  %979 = vmatprep.subr.mxu1 %v517_v15  ;;  %v1119_v21 = vld [vmem:[%s1550_s1 + $0x10] ss:$8 sps:$4 sm:$0xff]   ;;  %v499_v22 = vld [vmem:[%s1551_s2 + $0x60] sm:$0xff] }
  0x1b   : > { %980 = vmatpush3.msra.mxu1 %v501_v16  ;;  %v1120_v23 = vld [vmem:[%s1550_s1 + $0x4] ss:$8 sps:$4 sm:$0xff]   ;;  %v514_v24 = vld [vmem:[%s1551_s2 + $0xd8] sm:$0xff]  ;;  %v513_v26 = vld [vmem:[%s1551_s2 + $0xd0] sm:$0xff] }
  0x1c   : > { %981 = vmatprep.subr.mxu1 %v516_v18  ;;  %v498_v25 = vld [vmem:[%s1551_s2 + $0x58] sm:$0xff]  ;;  %v1122_v27 = vld [vmem:[%s1550_s1] ss:$8 sps:$4 sm:$0xff]   ;;  %v497_v28 = vld [vmem:[%s1551_s2 + $0x50] sm:$0xff] }
  0x1d   : > { %379 = vmatpush1.bf16.msra.mxu0 %v1107_v6  ;;  %982 = vmatpush3.msra.mxu1 %v500_v19  ;;  %v512_v29 = vld [vmem:[%s1551_s2 + $0xc8] sm:$0xff]  ;;  %v1123_v31 = vld [vmem:[%s1299_s28] sm:$0xff]   ;;  %v510_v34 = vld [vmem:[%s1551_s2 + $0xb8] sm:$0xff] }
  0x1e   : > { %380 = vmatprep.subr.bf16.mxu0 %v1108_v7  ;;  %983 = vmatprep.subr.mxu1 %v515_v20  ;;  %v496_v30 = vld [vmem:[%s1551_s2 + $0x48] sm:$0xff]  ;;  %v511_v32 = vld [vmem:[%s1551_s2 + $0xc0] sm:$0xff]  ;;  %v494_v35 = vld [vmem:[%s1551_s2 + $0x38] sm:$0xff] }
  0x1f   : > { %984 = vmatpush3.msra.mxu1 %v499_v22  ;;  %v495_v33 = vld [vmem:[%s1551_s2 + $0x40] sm:$0xff]  ;;  %v509_v36 = vld [vmem:[%s1551_s2 + $0xb0] sm:$0xff]  ;;  %v508_v38 = vld [vmem:[%s1551_s2 + $0xa8] sm:$0xff] }
  0x20   : > { %985 = vmatprep.subr.mxu1 %v514_v24  ;;  %v493_v37 = vld [vmem:[%s1551_s2 + $0x30] sm:$0xff]  ;;  %v492_v39 = vld [vmem:[%s1551_s2 + $0x28] sm:$0xff]  ;;  %v507_v41 = vld [vmem:[%s1551_s2 + $0xa0] sm:$0xff] }
  0x21   : > { %381 = vmatpush1.bf16.msra.mxu0 %v1110_v8  ;;  %986 = vmatpush3.msra.mxu1 %v498_v25  ;;  %v1124_v40 = vld [vmem:[%s1299_s28 + $0x8] sm:$0xff]   ;;  %v491_v42 = vld [vmem:[%s1551_s2 + $0x20] sm:$0xff]  ;;  %v506_v43 = vld [vmem:[%s1551_s2 + $0x98] sm:$0xff] }
  0x22   : > { %382 = vmatprep.subr.bf16.mxu0 %v1111_v9  ;;  %987 = vmatprep.subr.mxu1 %v513_v26  ;;  %v490_v44 = vld [vmem:[%s1551_s2 + $0x18] sm:$0xff]  ;;  %v505_v45 = vld [vmem:[%s1551_s2 + $0x90] sm:$0xff]  ;;  %v1127_v49 = vld [vmem:[%s1299_s28 + $0x20] sm:$0xff]  }
  0x23   : > { %988 = vmatpush3.msra.mxu1 %v497_v28  ;;  %v489_v46 = vld [vmem:[%s1551_s2 + $0x10] sm:$0xff]  ;;  %v1126_v48 = vld [vmem:[%s1299_s28 + $0x18] sm:$0xff]   ;;  %v1128_v50 = vld [vmem:[%s1299_s28 + $0x28] sm:$0xff]  }
  0x24   : > { %989 = vmatprep.subr.mxu1 %v512_v29  ;;  %v1125_v47 = vld [vmem:[%s1299_s28 + $0x10] sm:$0xff]   ;;  %v1130_v52 = vld [vmem:[%s1299_s28 + $0x38] sm:$0xff]   ;;  %v504_v53 = vld [vmem:[%s1551_s2 + $0x88] sm:$0xff] }
  0x25   : > { %383 = vmatpush1.bf16.msra.mxu0 %v1113_v10  ;;  %990 = vmatpush3.msra.mxu1 %v496_v30  ;;  %v1129_v51 = vld [vmem:[%s1299_s28 + $0x30] sm:$0xff]   ;;  %v488_v54 = vld [vmem:[%s1551_s2 + $0x8] sm:$0xff]  ;;  %v503_v55 = vld [vmem:[%s1551_s2 + $0x80] sm:$0xff]  ;;  %s190_s28 = sand.u32 1, %s1183_s16  }
  0x26   : > { %384 = vmatprep.subr.bf16.mxu0 %v1114_v11  ;;  %991 = vmatprep.subr.mxu1 %v511_v32  ;;  %v487_v56 = vld [vmem:[%s1551_s2] sm:$0xff]  ;;  %s908_s11 = sshll.u32 %s190_s28, 7  ;;  %s1471_s27 = scalar_lea.sflag [#allocation3], %s190_s28 }
  0x27   : > { %992 = vmatpush3.msra.mxu1 %v495_v33  ;;  %s1442_s12 = scalar_lea.vmem [#allocation2], %s908_s11 }
  0x28   : > { %993 = vmatprep.subr.mxu1 %v510_v34  ;;  %s813_s14 = sshll.u32 %s1442_s12, 4  ;;  %s1467_s14 = int_to_ptr.vmem [resolvable:$true] %s813_s14 }
  0x29   : > { %385 = vmatpush1.bf16.msra.mxu0 %v1116_v12  ;;  %994 = vmatpush3.msra.mxu1 %v494_v35  ;;  %s1131_s30 = scalar_lea.vmem %s1467_s14, 2048  ;;  %p1138_p0 = scmp.lt.s32.totalorder %s1467_s14, %s1136_s5 }
  0x2a   : > { %386 = vmatprep.subr.bf16.mxu0 %v1117_v17  ;;  %995 = vmatprep.subr.mxu1 %v509_v36  ;;  %p1132_p11 = scmp.ne.s32.totalorder %s1467_s14, %s1131_s30  ;;  %p1139_p1 = scmp.lt.s32.totalorder %s1137_s6, %s1131_s30 }
  0x2b   : > { %996 = vmatpush3.msra.mxu1 %v493_v37 }
  0x2c   : > { %997 = vmatprep.subr.mxu1 %v508_v38  ;;  %p1133_p12 = pnand %p1132_p11, %p1260_p5  ;;  %p1140_p2 = por %p1139_p1, %p1138_p0 }
  0x2d   : > { %387 = vmatpush1.bf16.msra.mxu0 %v1119_v21  ;;  %998 = vmatpush3.msra.mxu1 %v492_v39 }
  0x2e   : > { %388 = vmatprep.subr.bf16.mxu0 %v1120_v23  ;;  %999 = vmatprep.subr.mxu1 %v507_v41  ;;  %p1134_p13 = pneg %p1133_p12 }
  0x2f   : > { %1000 = vmatpush3.msra.mxu1 %v491_v42 }
  0x30   : > { %1001 = vmatprep.subr.mxu1 %v506_v43  ;;  %p1141_p3 = pnand %p1140_p2, %p1134_p13 }
  0x31   : > { %389 = vmatpush1.bf16.msra.mxu0 %v1122_v27  ;;  %1002 = vmatpush3.msra.mxu1 %v490_v44 }
  0x32   : > { %1003 = vmatprep.subr.mxu1 %v505_v45 }
  0x33   : > { %1004 = vmatpush3.msra.mxu1 %v489_v46 }
  0x34   : > { %407 = vmatmul.mubr.bf16.vlgmr.msra.gmra.mxu0 %v1123_v31  ;;  %1005 = vmatprep.subr.mxu1 %v504_v53 }
  0x35   : > { %416 = vmatprep.mubr.bf16.mxu0 %v1193_v2  ;;  %1006 = vmatpush3.msra.mxu1 %v488_v54 }
  0x36   : > { %1007 = vmatprep.subr.mxu1 %v503_v55 }
  0x37   : > { %1008 = vmatpush3.msra.mxu1 %v487_v56 }
  0x3c   : > { %417 = vmatmul.mubr.bf16.gmra.mxu0 %v1124_v40 }
  0x3d   : > { %426 = vmatprep.mubr.bf16.mxu0 %v1193_v2 }
  0x44   : > { %427 = vmatmul.mubr.bf16.gmra.mxu0 %v1125_v47 }
  0x45   : > { %436 = vmatprep.mubr.bf16.mxu0 %v1193_v2 }
  0x4c   : > { %437 = vmatmul.mubr.bf16.gmra.mxu0 %v1126_v48 }
  0x4d   : > { %446 = vmatprep.mubr.bf16.mxu0 %v1193_v2 }
  0x54   : > { %447 = vmatmul.mubr.bf16.gmra.mxu0 %v1127_v49 }
  0x55   : > { %456 = vmatprep.mubr.bf16.mxu0 %v1193_v2 }
  0x5c   : > { %457 = vmatmul.mubr.bf16.gmra.mxu0 %v1128_v50 }
  0x5d   : > { %466 = vmatprep.mubr.bf16.mxu0 %v1193_v2 }
  0x64   : > { %467 = vmatmul.mubr.bf16.gmra.mxu0 %v1129_v51 }
  0x65   : > { %476 = vmatprep.mubr.bf16.mxu0 %v1193_v2 }
  0x6c   : > { %477 = vmatmul.mubr.bf16.gmra.mxu0 %v1130_v52 }
  0xf4   : > { %v408_v57 = vpop.f32.mrf.mxu0 }
  0xf6   : > { %v410_v58 = vpop.f32.mrf.mxu0 }
  0xf7   : > { %v959_v59 = vpack.c.bf16 %v410_v58, %v408_v57  ;;  %583 = vmatprep.mubr.f32.mxu1 %v410_v58 }
  0xf8   : > { %v412_v60 = vpop.f32.mrf.mxu0  ;;  %584 = vmatmul.mubr.f32.vlgmr.msra.gmra.mxu1 %v408_v57 }
  0xf9   : > { %777 = vst [vmem:[%s1442_s12] sm:$0xff] %v959_v59 }
  0xfa   : > { %v414_v61 = vpop.f32.mrf.mxu0 }
  0xfb   : > { %v960_v62 = vpack.c.bf16 %v414_v61, %v412_v60  ;;  %588 = vmatprep.mubr.f32.mxu1 %v414_v61 }
  0xfc   : > { %v418_v63 = vpop.f32.mrf.mxu0  ;;  %589 = vmatmul.mubr.f32.gmra.mxu1 %v412_v60 }
  0xfd   : > { %778 = vst [vmem:[%s1442_s12 + $0x8] sm:$0xff] %v960_v62 }
  0xfe   : > { %v420_v0 = vpop.f32.mrf.mxu0 }
  0xff   : > { %v961_v1 = vpack.c.bf16 %v420_v0, %v418_v63  ;;  %593 = vmatprep.mubr.f32.mxu1 %v420_v0 }
 0x100   : > { %v422_v2 = vpop.f32.mrf.mxu0  ;;  %594 = vmatmul.mubr.f32.gmra.mxu1 %v418_v63 }
 0x101   : > { %779 = vst [vmem:[%s1442_s12 + $0x10] sm:$0xff] %v961_v1 }
 0x102   : > { %v424_v3 = vpop.f32.mrf.mxu0 }
 0x103   : > { %v962_v4 = vpack.c.bf16 %v424_v3, %v422_v2  ;;  %598 = vmatprep.mubr.f32.mxu1 %v424_v3 }
 0x104   : > { %v428_v5 = vpop.f32.mrf.mxu0  ;;  %599 = vmatmul.mubr.f32.gmra.mxu1 %v422_v2 }
 0x105   : > { %780 = vst [vmem:[%s1442_s12 + $0x18] sm:$0xff] %v962_v4 }
 0x106   : > { %v430_v6 = vpop.f32.mrf.mxu0 }
 0x107   : > { %v963_v7 = vpack.c.bf16 %v430_v6, %v428_v5  ;;  %603 = vmatprep.mubr.f32.mxu1 %v430_v6 }
 0x108   : > { %v432_v8 = vpop.f32.mrf.mxu0  ;;  %604 = vmatmul.mubr.f32.gmra.mxu1 %v428_v5 }
 0x109   : > { %781 = vst [vmem:[%s1442_s12 + $0x20] sm:$0xff] %v963_v7 }
 0x10a   : > { %v434_v9 = vpop.f32.mrf.mxu0 }
 0x10b   : > { %v964_v10 = vpack.c.bf16 %v434_v9, %v432_v8  ;;  %608 = vmatprep.mubr.f32.mxu1 %v434_v9 }
 0x10c   : > { %v438_v11 = vpop.f32.mrf.mxu0  ;;  %609 = vmatmul.mubr.f32.gmra.mxu1 %v432_v8 }
 0x10d   : > { %782 = vst [vmem:[%s1442_s12 + $0x28] sm:$0xff] %v964_v10 }
 0x10e   : > { %v440_v12 = vpop.f32.mrf.mxu0 }
 0x10f   : > { %v965_v13 = vpack.c.bf16 %v440_v12, %v438_v11  ;;  %613 = vmatprep.mubr.f32.mxu1 %v440_v12 }
 0x110   : > { %v442_v14 = vpop.f32.mrf.mxu0  ;;  %614 = vmatmul.mubr.f32.gmra.mxu1 %v438_v11 }
 0x111   : > { %783 = vst [vmem:[%s1442_s12 + $0x30] sm:$0xff] %v965_v13 }
 0x112   : > { %v444_v15 = vpop.f32.mrf.mxu0 }
 0x113   : > { %v966_v16 = vpack.c.bf16 %v444_v15, %v442_v14  ;;  %618 = vmatprep.mubr.f32.mxu1 %v444_v15 }
 0x114   : > { %v448_v17 = vpop.f32.mrf.mxu0  ;;  %619 = vmatmul.mubr.f32.gmra.mxu1 %v442_v14 }
 0x115   : > { %784 = vst [vmem:[%s1442_s12 + $0x38] sm:$0xff] %v966_v16 }
 0x116   : > { %v450_v18 = vpop.f32.mrf.mxu0 }
 0x117   : > { %v967_v19 = vpack.c.bf16 %v450_v18, %v448_v17  ;;  %623 = vmatprep.mubr.f32.mxu1 %v450_v18 }
 0x118   : > { %v452_v20 = vpop.f32.mrf.mxu0  ;;  %624 = vmatmul.mubr.f32.gmra.mxu1 %v448_v17 }
 0x119   : > { %785 = vst [vmem:[%s1442_s12 + $0x40] sm:$0xff] %v967_v19 }
 0x11a   : > { %v454_v21 = vpop.f32.mrf.mxu0 }
 0x11b   : > { %v968_v22 = vpack.c.bf16 %v454_v21, %v452_v20  ;;  %628 = vmatprep.mubr.f32.mxu1 %v454_v21 }
 0x11c   : > { %v458_v23 = vpop.f32.mrf.mxu0  ;;  %629 = vmatmul.mubr.f32.gmra.mxu1 %v452_v20 }
 0x11d   : > { %786 = vst [vmem:[%s1442_s12 + $0x48] sm:$0xff] %v968_v22 }
 0x11e   : > { %v460_v24 = vpop.f32.mrf.mxu0 }
 0x11f   : > { %v969_v25 = vpack.c.bf16 %v460_v24, %v458_v23  ;;  %633 = vmatprep.mubr.f32.mxu1 %v460_v24 }
 0x120   : > { %v462_v26 = vpop.f32.mrf.mxu0  ;;  %634 = vmatmul.mubr.f32.gmra.mxu1 %v458_v23 }
 0x121   : > { %787 = vst [vmem:[%s1442_s12 + $0x50] sm:$0xff] %v969_v25 }
 0x122   : > { %v464_v27 = vpop.f32.mrf.mxu0 }
 0x123   : > { %v970_v28 = vpack.c.bf16 %v464_v27, %v462_v26  ;;  %638 = vmatprep.mubr.f32.mxu1 %v464_v27 }
 0x124   : > { %v468_v29 = vpop.f32.mrf.mxu0  ;;  %639 = vmatmul.mubr.f32.gmra.mxu1 %v462_v26 }
 0x125   : > { %788 = vst [vmem:[%s1442_s12 + $0x58] sm:$0xff] %v970_v28 }
 0x126   : > { %v470_v30 = vpop.f32.mrf.mxu0 }
 0x127   : > { %v971_v31 = vpack.c.bf16 %v470_v30, %v468_v29  ;;  %643 = vmatprep.mubr.f32.mxu1 %v470_v30 }
 0x128   : > { %v472_v32 = vpop.f32.mrf.mxu0  ;;  %644 = vmatmul.mubr.f32.gmra.mxu1 %v468_v29 }
 0x129   : > { %789 = vst [vmem:[%s1442_s12 + $0x60] sm:$0xff] %v971_v31 }
 0x12a   : > { %v474_v33 = vpop.f32.mrf.mxu0 }
 0x12b   : > { %v972_v34 = vpack.c.bf16 %v474_v33, %v472_v32  ;;  %648 = vmatprep.mubr.f32.mxu1 %v474_v33 }
 0x12c   : > { %v478_v35 = vpop.f32.mrf.mxu0  ;;  %649 = vmatmul.mubr.f32.gmra.mxu1 %v472_v32 }
 0x12d   : > { %790 = vst [vmem:[%s1442_s12 + $0x68] sm:$0xff] %v972_v34 }
 0x12e   : > { %v480_v36 = vpop.f32.mrf.mxu0 }
 0x12f   : > { %v973_v37 = vpack.c.bf16 %v480_v36, %v478_v35  ;;  %653 = vmatprep.mubr.f32.mxu1 %v480_v36 }
 0x130   : > { %v482_v38 = vpop.f32.mrf.mxu0  ;;  %654 = vmatmul.mubr.f32.gmra.mxu1 %v478_v35 }
 0x131   : > { %791 = vst [vmem:[%s1442_s12 + $0x70] sm:$0xff] %v973_v37 }
 0x132   : > { %v484_v39 = vpop.f32.mrf.mxu0 }
 0x133   : > { %v974_v40 = vpack.c.bf16 %v484_v39, %v482_v38  ;;  %658 = vmatprep.mubr.f32.mxu1 %v484_v39 }
 0x134   : > { %659 = vmatmul.mubr.f32.gmra.mxu1 %v482_v38 }
 0x135   : > { %792 = vst [vmem:[%s1442_s12 + $0x78] sm:$0xff] %v974_v40 }
 0x136   : > { %1144 = shalt.err (!%p1141_p3)
}
 0x137   : > { %s1145_s7 = scalar_lea.hbm %s1465_s23, 2048  ;;  %s1149_s10 = scalar_lea.hbm %s1552_s3, 4096 }
 0x138   : > { %p1146_p4 = scmp.ne.s32.totalorder %s1465_s23, %s1145_s7  ;;  %p1150_p9 = scmp.lt.s32.totalorder %s1465_s23, %s1552_s3 }
 0x139   : > { %p1151_p10 = scmp.lt.s32.totalorder %s1149_s10, %s1145_s7 }
 0x13a   : > { %p1147_p7 = pnand %p1146_p4, %p1260_p5 }
 0x13b   : > { %p1152_p11 = por %p1151_p10, %p1150_p9 }
 0x13c   : > { %p1148_p8 = pneg %p1147_p7 }
 0x13e   : > { %p1153_p12 = pnand %p1152_p11, %p1148_p8 }
 0x140   : > { %1156 = shalt.err (!%p1153_p12)
}
 0x141   : > { %s1195_s12 = smov 128   ;;  %s1196_s13 = smov 8   ;;  %vm664_vm0 = vcmask 31744  }
 0x142   : > { %1057 = dma.vmem_to_hbm [thread:$0]  (%p1260_p5), %s1467_s14, 2048, %s1465_s23, %s1471_s27, %s1195_s12, %s1195_s12, %s1196_s13  }
 0x143   : > { %s912_s20 = sshll.u32 %s1561_s29, 3 }
 0x144   : > { %s1498_s19 = scalar_lea.vmem %s1553_s4, %s912_s20 }
 0x1b8   : > { %v1009_v41 = vpop.f32.mrf.mxu1 }
 0x1ba   : > { %v1010_v42 = vpop.f32.mrf.mxu1 }
 0x1bb   : > { %v1011_v43 = vadd.f32 %v1010_v42, %v1009_v41 }
 0x1bc   : > { %v1012_v44 = vpop.f32.mrf.mxu1 }
 0x1bd   : > { %665 = vst.msk [vmem:[%s1498_s19] sm:$0xff] %vm664_vm0, %v1011_v43 }
 0x1be   : > { %v1013_v45 = vpop.f32.mrf.mxu1 }
 0x1bf   : > { %v1014_v46 = vadd.f32 %v1013_v45, %v1012_v44 }
 0x1c0   : > { %v1015_v47 = vpop.f32.mrf.mxu1 }
 0x1c1   : > { %666 = vst.msk [vmem:[%s1498_s19 + $0x8] sm:$0xff] %vm664_vm0, %v1014_v46 }
 0x1c2   : > { %v1016_v48 = vpop.f32.mrf.mxu1 }
 0x1c3   : > { %v1017_v49 = vadd.f32 %v1016_v48, %v1015_v47 }
 0x1c4   : > { %v1018_v50 = vpop.f32.mrf.mxu1 }
 0x1c5   : > { %667 = vst.msk [vmem:[%s1498_s19 + $0x10] sm:$0xff] %vm664_vm0, %v1017_v49 }
 0x1c6   : > { %v1019_v51 = vpop.f32.mrf.mxu1 }
 0x1c7   : > { %v1020_v52 = vadd.f32 %v1019_v51, %v1018_v50 }
 0x1c8   : > { %v1021_v53 = vpop.f32.mrf.mxu1 }
 0x1c9   : > { %668 = vst.msk [vmem:[%s1498_s19 + $0x18] sm:$0xff] %vm664_vm0, %v1020_v52 }
 0x1ca   : > { %v1022_v54 = vpop.f32.mrf.mxu1 }
 0x1cb   : > { %v1023_v55 = vadd.f32 %v1022_v54, %v1021_v53 }
 0x1cc   : > { %v1024_v56 = vpop.f32.mrf.mxu1 }
 0x1cd   : > { %669 = vst.msk [vmem:[%s1498_s19 + $0x20] sm:$0xff] %vm664_vm0, %v1023_v55 }
 0x1ce   : > { %v1025_v57 = vpop.f32.mrf.mxu1 }
 0x1cf   : > { %v1026_v58 = vadd.f32 %v1025_v57, %v1024_v56 }
 0x1d0   : > { %v1027_v59 = vpop.f32.mrf.mxu1 }
 0x1d1   : > { %670 = vst.msk [vmem:[%s1498_s19 + $0x28] sm:$0xff] %vm664_vm0, %v1026_v58 }
 0x1d2   : > { %v1028_v60 = vpop.f32.mrf.mxu1 }
 0x1d3   : > { %v1029_v61 = vadd.f32 %v1028_v60, %v1027_v59 }
 0x1d4   : > { %v1030_v62 = vpop.f32.mrf.mxu1 }
 0x1d5   : > { %671 = vst.msk [vmem:[%s1498_s19 + $0x30] sm:$0xff] %vm664_vm0, %v1029_v61 }
 0x1d6   : > { %v1031_v63 = vpop.f32.mrf.mxu1 }
 0x1d7   : > { %v1032_v0 = vadd.f32 %v1031_v63, %v1030_v62 }
 0x1d8   : > { %v1033_v1 = vpop.f32.mrf.mxu1 }
 0x1d9   : > { %672 = vst.msk [vmem:[%s1498_s19 + $0x38] sm:$0xff] %vm664_vm0, %v1032_v0 }
 0x1da   : > { %v1034_v2 = vpop.f32.mrf.mxu1 }
 0x1db   : > { %v1035_v3 = vadd.f32 %v1034_v2, %v1033_v1 }
 0x1dc   : > { %v1036_v4 = vpop.f32.mrf.mxu1 }
 0x1dd   : > { %673 = vst.msk [vmem:[%s1498_s19 + $0x40] sm:$0xff] %vm664_vm0, %v1035_v3 }
 0x1de   : > { %v1037_v5 = vpop.f32.mrf.mxu1 }
 0x1df   : > { %v1038_v6 = vadd.f32 %v1037_v5, %v1036_v4 }
 0x1e0   : > { %v1039_v7 = vpop.f32.mrf.mxu1 }
 0x1e1   : > { %674 = vst.msk [vmem:[%s1498_s19 + $0x48] sm:$0xff] %vm664_vm0, %v1038_v6 }
 0x1e2   : > { %v1040_v8 = vpop.f32.mrf.mxu1 }
 0x1e3   : > { %v1041_v9 = vadd.f32 %v1040_v8, %v1039_v7 }
 0x1e4   : > { %v1042_v10 = vpop.f32.mrf.mxu1 }
 0x1e5   : > { %675 = vst.msk [vmem:[%s1498_s19 + $0x50] sm:$0xff] %vm664_vm0, %v1041_v9 }
 0x1e6   : > { %v1043_v11 = vpop.f32.mrf.mxu1 }
 0x1e7   : > { %v1044_v12 = vadd.f32 %v1043_v11, %v1042_v10 }
 0x1e8   : > { %v1045_v13 = vpop.f32.mrf.mxu1 }
 0x1e9   : > { %676 = vst.msk [vmem:[%s1498_s19 + $0x58] sm:$0xff] %vm664_vm0, %v1044_v12 }
 0x1ea   : > { %v1046_v14 = vpop.f32.mrf.mxu1 }
 0x1eb   : > { %v1047_v15 = vadd.f32 %v1046_v14, %v1045_v13 }
 0x1ec   : > { %v1048_v16 = vpop.f32.mrf.mxu1 }
 0x1ed   : > { %677 = vst.msk [vmem:[%s1498_s19 + $0x60] sm:$0xff] %vm664_vm0, %v1047_v15 }
 0x1ee   : > { %v1049_v17 = vpop.f32.mrf.mxu1 }
 0x1ef   : > { %v1050_v18 = vadd.f32 %v1049_v17, %v1048_v16 }
 0x1f0   : > { %v1051_v19 = vpop.f32.mrf.mxu1 }
 0x1f1   : > { %678 = vst.msk [vmem:[%s1498_s19 + $0x68] sm:$0xff] %vm664_vm0, %v1050_v18 }
 0x1f2   : > { %v1052_v20 = vpop.f32.mrf.mxu1 }
 0x1f3   : > { %v1053_v21 = vadd.f32 %v1052_v20, %v1051_v19 }
 0x1f4   : > { %v1054_v22 = vpop.f32.mrf.mxu1 }
 0x1f5   : > { %679 = vst.msk [vmem:[%s1498_s19 + $0x70] sm:$0xff] %vm664_vm0, %v1053_v21 }
 0x1f6   : > { %v1055_v23 = vpop.f32.mrf.mxu1 }
 0x1f7   : > { %v1056_v24 = vadd.f32 %v1055_v23, %v1054_v22 }
 0x1f9   : > { %680 = vst.msk [vmem:[%s1498_s19 + $0x78] sm:$0xff] %vm664_vm0, %v1056_v24 }
 0x1fa PF: > { %p1063_p5 = scmp.ge.s32.totalorder %s1191_s18, 2  ;;  %s832_s25 = sand.u32 1, %s1179_s15  }
 0x1fb   : > { %s833_s29 = scalar_lea.sflag [#allocation3], %s832_s25 }
 0x1fc   : > { %p1060_p13 = pnand %p1063_p5, %p1264_p6 }
 0x1fe   : > { %p1061_p0 = pneg %p1060_p13 }
 0x200   : > { %1174 = dma.done.wait (%p1061_p0), %s833_s29, 2048  }
 0x201   : > { %1176 = vsyncadd (%p1061_p0), %s833_s29, 4294965248  ;;  %p15_p1 = scmp.ge.s32.totalorder %s1247_s21, 4   ;;  %s1556_s15 = smov %s1183_s16 }
 0x202   : > { %s1557_s16 = smov %s1187_s17  ;;  %s1558_s17 = smov %s1258_s24 }
 0x203   : > { %s1559_s18 = smov %s1247_s21  ;;  %17 = sbr.rel (!%p15_p1) target bundleno = 3 (0x3), region = 79 }
 0x208   :  { %846 = vsyncpa [#allocation3], 1 }
 0x209   :  { %848 = vsyncpa [#allocation3 + $0x1], 1 }

</bundles_post_ra>
